<compile_context>
chip_gen: v7x
topology: tpu7x:2x2x1
jax: 0.10.0
libtpu: 0.0.40
codegen_flags: <defaults>
</compile_context>

<pallas_src>
import math

import jax
import jax.numpy as jnp
from jax import lax
from jax.experimental import pallas as pl
from jax.experimental.pallas import tpu as pltpu


def _dmhsa_head_kernel(x_ref, wq_ref, wk_ref, wv_ref, bv_ref, o_ref, attn_ref):
    """One (batch, head) tile: project, dynamic-mask softmax, attend."""
    x = x_ref[...]                         # (N, C), in model dtype
    mxu_dtype = x_ref.dtype                # operand dtype for throughput matmuls

    # Per-head projections on the MXU (scale already folded into wq).
    qh = jnp.dot(x, wq_ref[...], preferred_element_type=jnp.float32)   # (N, Dh)
    kh = jnp.dot(x, wk_ref[...], preferred_element_type=jnp.float32)   # (N, Dh)
    vh = jnp.dot(x, wv_ref[...], preferred_element_type=jnp.float32) + bv_ref[...]

    # Scores q_h @ k_h^T — kept with f32 operands: the >= mean mask is
    # discontinuous and tie-sensitive, so don't down-cast this matmul.
    s = lax.dot_general(qh, kh, (((1,), (1,)), ((), ())),
                        preferred_element_type=jnp.float32)             # (N, N)

    # Dynamic mask: keep entries >= their row mean; dropped entries -> -1e10.
    row_mean = jnp.mean(s, axis=-1, keepdims=True)
    logits = jnp.where(s >= row_mean, s, jnp.float32(-1e10))

    # Row max of s is always kept (max >= mean), so max(logits) == max(s):
    # skip the extra (N, N) select+max pass over the masked logits.
    mx = jnp.max(s, axis=-1, keepdims=True)
    e = jnp.exp(logits - mx)
    inv_denom = pl.reciprocal(jnp.sum(e, axis=-1, keepdims=True), approx=False)
    p = e * inv_denom                                                    # (N, N) f32

    attn_ref[...] = p.astype(attn_ref.dtype)
    # p @ v_h with MXU operands in the model dtype, f32 accumulation.
    o_ref[...] = jnp.dot(p.astype(mxu_dtype), vh.astype(mxu_dtype),
                         preferred_element_type=jnp.float32).astype(o_ref.dtype)


def _vmem_limit_bytes() -> int:
    """Generation-aware VMEM cap: big tiles on v5e/v6e, headroom on v7x."""
    try:
        cap = int(pltpu.get_tpu_info().vmem_capacity_bytes)
    except Exception:
        cap = 128 * 1024 * 1024
    if cap <= 64 * 1024 * 1024:            # v7x: 64 MiB per TensorCore
        return 48 * 1024 * 1024
    return 100 * 1024 * 1024               # v5e / v6e: 128 MiB physical


def dmhsa_forward(x, wq, wk, wv, bv, *, num_heads: int):
    """x: (B, N, C); wq/wk/wv: (C, C) PyTorch layout (out, in); bv: (C,).

    Returns (out (B, N, C), attn (B, num_heads, N, N)) matching DMHSA.forward.
    """
    B, N, C = x.shape
    H = num_heads
    assert C % H == 0, "dim must be divisible by num_heads"
    Dh = C // H
    scale = float(C) ** -0.5               # PyTorch uses x.shape[-1]**-0.5 (= C)

    # PyTorch Linear computes x @ W^T; head h uses columns [h*Dh, (h+1)*Dh) of
    # W^T.  Reshape to (H, C, Dh) so BlockSpec can hand each program its own
    # head slice.  Fold the softmax scale into Wq (mathematically identical).
    wq_h = (wq.T * scale).reshape(C, H, Dh).transpose(1, 0, 2).astype(x.dtype)
    wk_h = wk.T.reshape(C, H, Dh).transpose(1, 0, 2).astype(x.dtype)
    wv_h = wv.T.reshape(C, H, Dh).transpose(1, 0, 2).astype(x.dtype)
    bv_h = bv.reshape(H, 1, Dh).astype(jnp.float32)   # added to f32 v

    out_hd, attn = pl.pallas_call(
        _dmhsa_head_kernel,
        out_shape=(jax.ShapeDtypeStruct((B, H, N, Dh), x.dtype),
                   jax.ShapeDtypeStruct((B, H, N, N), x.dtype)),
        grid_spec=pltpu.PrefetchScalarGridSpec(
            num_scalar_prefetch=0,
            grid=(B, H),
            in_specs=[
                # x slab: lane-dense on C; index depends only on b, so it is
                # not re-fetched across the H inner iterations.
                pl.BlockSpec((None, N, C), lambda b, h: (b, 0, 0)),
                # Per-head weight slices (C, Dh) and bias (1, Dh).
                pl.BlockSpec((None, C, Dh), lambda b, h: (h, 0, 0)),
                pl.BlockSpec((None, C, Dh), lambda b, h: (h, 0, 0)),
                pl.BlockSpec((None, C, Dh), lambda b, h: (h, 0, 0)),
                pl.BlockSpec((None, 1, Dh), lambda b, h: (h, 0, 0)),
            ],
            out_specs=[
                # Head-major output: one full-block store per step.
                pl.BlockSpec((None, None, N, Dh), lambda b, h: (b, h, 0, 0)),
                # Attention probabilities: per-head (N, N) block.
                pl.BlockSpec((None, None, N, N), lambda b, h: (b, h, 0, 0)),
            ],
        ),
        compiler_params=pltpu.CompilerParams(
            dimension_semantics=("parallel", "parallel"),
            vmem_limit_bytes=_vmem_limit_bytes(),
        ),
    )(x, wq_h, wk_h, wv_h, bv_h)

    # (B, H, N, Dh) -> (B, N, H, Dh) -> (B, N, C): the permute+reshape of the
    # PyTorch code, done as cheap XLA layout plumbing outside the kernel.
    out = out_hd.transpose(0, 2, 1, 3).reshape(B, N, C)
    return out, attn


def _dmhsa_reference(x, wq, wk, wv, bv, num_heads):
    """Plain-JAX reproduction of the PyTorch DMHSA.forward."""
    B, N, C = x.shape
    H = num_heads
    Dh = C // H
    hi = lax.Precision.HIGHEST
    q = jnp.dot(x, wq.T, precision=hi).reshape(B, N, H, Dh).transpose(0, 2, 1, 3)
    k = jnp.dot(x, wk.T, precision=hi).reshape(B, N, H, Dh).transpose(0, 2, 1, 3)
    v = (jnp.dot(x, wv.T, precision=hi) + bv).reshape(B, N, H, Dh).transpose(0, 2, 1, 3)
    attn = jnp.einsum("bhnd,bhmd->bhnm", q, k, precision=hi) * (float(C) ** -0.5)
    keep = attn >= jnp.mean(attn, axis=-1, keepdims=True)
    logits = jnp.where(keep, attn, -1e10)
    p = jax.nn.softmax(logits, axis=-1)
    out = jnp.einsum("bhnm,bhmd->bhnd", p, v,
                     precision=hi).transpose(0, 2, 1, 3).reshape(B, N, C)
    return out, p


if __name__ == "__main__":
    key = jax.random.PRNGKey(0)
    B, N, C, H = 2, 8, 32, 4              # batch=2, seq=8, hidden=32, 4 heads (Dh=8)
    kx, kq, kk, kv, kb = jax.random.split(key, 5)
    x = jax.random.normal(kx, (B, N, C), dtype=jnp.float32)
    wq = jax.random.normal(kq, (C, C), dtype=jnp.float32) * (1.0 / math.sqrt(C))
    wk = jax.random.normal(kk, (C, C), dtype=jnp.float32) * (1.0 / math.sqrt(C))
    wv = jax.random.normal(kv, (C, C), dtype=jnp.float32) * (1.0 / math.sqrt(C))
    bv = jax.random.normal(kb, (C,), dtype=jnp.float32) * 0.1

    out, attn = dmhsa_forward(x, wq, wk, wv, bv, num_heads=H)
    out = jax.block_until_ready(out)
    attn = jax.block_until_ready(attn)

    ref_out, ref_attn = _dmhsa_reference(x, wq, wk, wv, bv, H)

    assert out.shape == (B, N, C) and attn.shape == (B, H, N, N)
    assert jnp.allclose(attn, ref_attn, atol=1e-4, rtol=1e-4), \
        float(jnp.max(jnp.abs(attn - ref_attn)))
    assert jnp.allclose(out, ref_out, atol=1e-4, rtol=1e-4), \
        float(jnp.max(jnp.abs(out - ref_out)))
    print("KERNEL_OK")
</pallas_src>

<mosaic_0001>
module attributes {stable_mosaic.version = 11 : i64} {
  func.func @_dmhsa_head_kernel(%arg0: i32, %arg1: i32, %arg2: memref<1x8x32xf32, #tpu.memory_space<vmem>>, %arg3: memref<1x32x8xf32, #tpu.memory_space<vmem>>, %arg4: memref<1x32x8xf32, #tpu.memory_space<vmem>>, %arg5: memref<1x32x8xf32, #tpu.memory_space<vmem>>, %arg6: memref<1x1x8xf32, #tpu.memory_space<vmem>>, %arg7: memref<1x1x8x8xf32, #tpu.memory_space<vmem>>, %arg8: memref<1x1x8x8xf32, #tpu.memory_space<vmem>>) attributes {dimension_semantics = [#tpu.dimension_semantics<parallel>, #tpu.dimension_semantics<parallel>], iteration_bounds = array<i64: 2, 4>, scalar_prefetch = 0 : i64, scratch_operands = 0 : i64, tpu.core_type = #tpu.core_type<tc>, window_params = [{transform_indices = @transform_0, window_bounds = array<i64: 1, 8, 32>}, {transform_indices = @transform_1, window_bounds = array<i64: 1, 32, 8>}, {transform_indices = @transform_2, window_bounds = array<i64: 1, 32, 8>}, {transform_indices = @transform_3, window_bounds = array<i64: 1, 32, 8>}, {transform_indices = @transform_4, window_bounds = array<i64: 1, 1, 8>}, {transform_indices = @transform_5, window_bounds = array<i64: 1, 1, 8, 8>}, {transform_indices = @transform_6, window_bounds = array<i64: 1, 1, 8, 8>}]} {
    %c0 = arith.constant 0 : index
    %c0_0 = arith.constant 0 : index
    %c0_1 = arith.constant 0 : index
    %0 = vector.load %arg2[%c0, %c0_0, %c0_1] : memref<1x8x32xf32, #tpu.memory_space<vmem>>, vector<1x8x32xf32>
    %1 = vector.shape_cast %0 : vector<1x8x32xf32> to vector<8x32xf32>
    %c0_2 = arith.constant 0 : index
    %c0_3 = arith.constant 0 : index
    %c0_4 = arith.constant 0 : index
    %2 = vector.load %arg3[%c0_2, %c0_3, %c0_4] : memref<1x32x8xf32, #tpu.memory_space<vmem>>, vector<1x32x8xf32>
    %3 = vector.shape_cast %2 : vector<1x32x8xf32> to vector<32x8xf32>
    %cst = arith.constant dense<0.000000e+00> : vector<8x8xf32>
    %4 = tpu.matmul %1, %3, %cst {dimension_numbers = #tpu.dot_dimension_numbers<[1], [0], [0], [1], [0, 0, 1, 1], [], []>} : vector<8x32xf32>, vector<32x8xf32>, vector<8x8xf32> -> vector<8x8xf32>
    %c0_5 = arith.constant 0 : index
    %c0_6 = arith.constant 0 : index
    %c0_7 = arith.constant 0 : index
    %5 = vector.load %arg4[%c0_5, %c0_6, %c0_7] : memref<1x32x8xf32, #tpu.memory_space<vmem>>, vector<1x32x8xf32>
    %6 = vector.shape_cast %5 : vector<1x32x8xf32> to vector<32x8xf32>
    %cst_8 = arith.constant dense<0.000000e+00> : vector<8x8xf32>
    %7 = tpu.matmul %1, %6, %cst_8 {dimension_numbers = #tpu.dot_dimension_numbers<[1], [0], [0], [1], [0, 0, 1, 1], [], []>} : vector<8x32xf32>, vector<32x8xf32>, vector<8x8xf32> -> vector<8x8xf32>
    %c0_9 = arith.constant 0 : index
    %c0_10 = arith.constant 0 : index
    %c0_11 = arith.constant 0 : index
    %8 = vector.load %arg5[%c0_9, %c0_10, %c0_11] : memref<1x32x8xf32, #tpu.memory_space<vmem>>, vector<1x32x8xf32>
    %9 = vector.shape_cast %8 : vector<1x32x8xf32> to vector<32x8xf32>
    %cst_12 = arith.constant dense<0.000000e+00> : vector<8x8xf32>
    %10 = tpu.matmul %1, %9, %cst_12 {dimension_numbers = #tpu.dot_dimension_numbers<[1], [0], [0], [1], [0, 0, 1, 1], [], []>} : vector<8x32xf32>, vector<32x8xf32>, vector<8x8xf32> -> vector<8x8xf32>
    %c0_13 = arith.constant 0 : index
    %c0_14 = arith.constant 0 : index
    %c0_15 = arith.constant 0 : index
    %11 = vector.load %arg6[%c0_13, %c0_14, %c0_15] : memref<1x1x8xf32, #tpu.memory_space<vmem>>, vector<1x1x8xf32>
    %12 = vector.shape_cast %11 : vector<1x1x8xf32> to vector<1x8xf32>
    %13 = vector.broadcast %12 : vector<1x8xf32> to vector<8x8xf32>
    %14 = arith.addf %10, %13 : vector<8x8xf32>
    %cst_16 = arith.constant dense<0.000000e+00> : vector<8x8xf32>
    %15 = tpu.matmul %4, %7, %cst_16 {dimension_numbers = #tpu.dot_dimension_numbers<[1], [1], [0], [0], [0, 0, 1, 0], [], []>} : vector<8x8xf32>, vector<8x8xf32>, vector<8x8xf32> -> vector<8x8xf32>
    %cst_17 = arith.constant dense<0.000000e+00> : vector<8xf32>
    %16 = vector.multi_reduction <add>, %15, %cst_17 [1] : vector<8x8xf32> to vector<8xf32>
    %17 = vector.shape_cast %16 : vector<8xf32> to vector<8x1xf32>
    %cst_18 = arith.constant 8.000000e+00 : f32
    %18 = vector.broadcast %cst_18 : f32 to vector<8x1xf32>
    %19 = arith.divf %17, %18 : vector<8x1xf32>
    %20 = vector.broadcast %19 : vector<8x1xf32> to vector<8x8xf32>
    %21 = arith.cmpf oge, %15, %20 : vector<8x8xf32>
    %cst_19 = arith.constant -1.000000e+10 : f32
    %22 = vector.broadcast %cst_19 : f32 to vector<8x8xf32>
    %23 = arith.select %21, %15, %22 : vector<8x8xi1>, vector<8x8xf32>
    %cst_20 = arith.constant dense<0xFF800000> : vector<8xf32>
    %24 = vector.multi_reduction <maximumf>, %15, %cst_20 [1] : vector<8x8xf32> to vector<8xf32>
    %25 = vector.shape_cast %24 : vector<8xf32> to vector<8x1xf32>
    %26 = vector.broadcast %25 : vector<8x1xf32> to vector<8x8xf32>
    %27 = arith.subf %23, %26 : vector<8x8xf32>
    %28 = math.exp %27 : vector<8x8xf32>
    %cst_21 = arith.constant dense<0.000000e+00> : vector<8xf32>
    %29 = vector.multi_reduction <add>, %28, %cst_21 [1] : vector<8x8xf32> to vector<8xf32>
    %30 = vector.shape_cast %29 : vector<8xf32> to vector<8x1xf32>
    %31 = tpu.reciprocal %30 : vector<8x1xf32> -> vector<8x1xf32>
    %32 = vector.broadcast %31 : vector<8x1xf32> to vector<8x8xf32>
    %33 = arith.mulf %28, %32 : vector<8x8xf32>
    %c0_22 = arith.constant 0 : index
    %c0_23 = arith.constant 0 : index
    %c0_24 = arith.constant 0 : index
    %c0_25 = arith.constant 0 : index
    %34 = vector.load %arg8[%c0_22, %c0_23, %c0_24, %c0_25] : memref<1x1x8x8xf32, #tpu.memory_space<vmem>>, vector<1x1x8x8xf32>
    %35 = vector.shape_cast %34 : vector<1x1x8x8xf32> to vector<8x8xf32>
    %36 = vector.shape_cast %33 : vector<8x8xf32> to vector<1x1x8x8xf32>
    tpu.vector_store %arg8[%c0_22, %c0_23, %c0_24, %c0_25], %36 {strides = array<i32>} : memref<1x1x8x8xf32, #tpu.memory_space<vmem>>, vector<1x1x8x8xf32>,
    %cst_26 = arith.constant dense<0.000000e+00> : vector<8x8xf32>
    %37 = tpu.matmul %33, %14, %cst_26 {dimension_numbers = #tpu.dot_dimension_numbers<[1], [0], [0], [1], [0, 0, 1, 1], [], []>} : vector<8x8xf32>, vector<8x8xf32>, vector<8x8xf32> -> vector<8x8xf32>
    %c0_27 = arith.constant 0 : index
    %c0_28 = arith.constant 0 : index
    %c0_29 = arith.constant 0 : index
    %c0_30 = arith.constant 0 : index
    %38 = vector.load %arg7[%c0_27, %c0_28, %c0_29, %c0_30] : memref<1x1x8x8xf32, #tpu.memory_space<vmem>>, vector<1x1x8x8xf32>
    %39 = vector.shape_cast %38 : vector<1x1x8x8xf32> to vector<8x8xf32>
    %40 = vector.shape_cast %37 : vector<8x8xf32> to vector<1x1x8x8xf32>
    tpu.vector_store %arg7[%c0_27, %c0_28, %c0_29, %c0_30], %40 {strides = array<i32>} : memref<1x1x8x8xf32, #tpu.memory_space<vmem>>, vector<1x1x8x8xf32>,
    return
  }
  func.func @transform_0(%arg0: i32, %arg1: i32) -> (i32, i32, i32) {
    %c0_i32 = arith.constant 0 : i32
    %c0_i32_0 = arith.constant 0 : i32
    %c0_i32_1 = arith.constant 0 : i32
    return %arg0, %c0_i32, %c0_i32_0 : i32, i32, i32
  }
  func.func @transform_1(%arg0: i32, %arg1: i32) -> (i32, i32, i32) {
    %c0_i32 = arith.constant 0 : i32
    %c0_i32_0 = arith.constant 0 : i32
    %c0_i32_1 = arith.constant 0 : i32
    return %arg1, %c0_i32, %c0_i32_0 : i32, i32, i32
  }
  func.func @transform_2(%arg0: i32, %arg1: i32) -> (i32, i32, i32) {
    %c0_i32 = arith.constant 0 : i32
    %c0_i32_0 = arith.constant 0 : i32
    %c0_i32_1 = arith.constant 0 : i32
    return %arg1, %c0_i32, %c0_i32_0 : i32, i32, i32
  }
  func.func @transform_3(%arg0: i32, %arg1: i32) -> (i32, i32, i32) {
    %c0_i32 = arith.constant 0 : i32
    %c0_i32_0 = arith.constant 0 : i32
    %c0_i32_1 = arith.constant 0 : i32
    return %arg1, %c0_i32, %c0_i32_0 : i32, i32, i32
  }
  func.func @transform_4(%arg0: i32, %arg1: i32) -> (i32, i32, i32) {
    %c0_i32 = arith.constant 0 : i32
    %c0_i32_0 = arith.constant 0 : i32
    %c0_i32_1 = arith.constant 0 : i32
    return %arg1, %c0_i32, %c0_i32_0 : i32, i32, i32
  }
  func.func @transform_5(%arg0: i32, %arg1: i32) -> (i32, i32, i32, i32) {
    %c0_i32 = arith.constant 0 : i32
    %c0_i32_0 = arith.constant 0 : i32
    %c0_i32_1 = arith.constant 0 : i32
    return %arg0, %arg1, %c0_i32, %c0_i32_0 : i32, i32, i32, i32
  }
  func.func @transform_6(%arg0: i32, %arg1: i32) -> (i32, i32, i32, i32) {
    %c0_i32 = arith.constant 0 : i32
    %c0_i32_0 = arith.constant 0 : i32
    %c0_i32_1 = arith.constant 0 : i32
    return %arg0, %arg1, %c0_i32, %c0_i32_0 : i32, i32, i32, i32
  }
}

</mosaic_0001>

<bundles_post_ra>
// kernel: tpu_custom_call.1
= control target key start
LH: loop header
LB: loop body
LE: loop exit
PB: predicated region body
PF: predicated region fallthrough
CT: control target
= control target key end

     0   :  { %s2265_s0 = inlined_call_operand.hbm [shape: f32[2,8,32], index: 0, kind: input, shape index: {}]   ;;  %s2266_s1 = inlined_call_operand.hbm [shape: f32[4,32,8], index: 1, kind: input, shape index: {}]   ;;  %s2267_s2 = inlined_call_operand.hbm [shape: f32[4,32,8], index: 2, kind: input, shape index: {}]   ;;  %s2268_s3 = inlined_call_operand.hbm [shape: f32[4,32,8], index: 3, kind: input, shape index: {}]   ;;  %s2269_s4 = inlined_call_operand.hbm [shape: f32[4,1,8], index: 4, kind: input, shape index: {}]   ;;  %s2270_s5 = inlined_call_operand.hbm [shape: f32[2,4,8,8], index: 5, kind: output, shape index: {0}]   ;;  %s2271_s6 = inlined_call_operand.hbm [shape: f32[2,4,8,8], index: 6, kind: output, shape index: {1}]  }
   0x1   :  { %2301 = sst [smem:[#allocation34_spill]] %s2266_s1 }
   0x2   :  { %2302 = sst [smem:[#allocation35_spill]] %s2268_s3 }
   0x3   :  { %2303 = sst [smem:[#allocation36_spill]] %s2269_s4 }
   0x4   :  { %2304 = sst [smem:[#allocation37_spill]] %s2270_s5 }
   0x5   :  { %2305 = sst [smem:[#allocation38_spill]] %s2271_s6 }
   0x6   :  { %12 = vsyncpa [#allocation3], 0 }
   0x7   :  { %14 = vsyncpa [#allocation3 + $0x1], 0 }
   0x8   :  { %15 = vsyncpa [#allocation6], 0 }
   0x9   :  { %17 = vsyncpa [#allocation6 + $0x1], 0 }
   0xa   :  { %18 = vsyncpa [#allocation9], 0 }
   0xb   :  { %20 = vsyncpa [#allocation9 + $0x1], 0 }
   0xc   :  { %21 = vsyncpa [#allocation4], 0 }
   0xd   :  { %23 = vsyncpa [#allocation4 + $0x1], 0 }
   0xe   :  { %24 = vsyncpa [#allocation13], 0 }
   0xf   :  { %26 = vsyncpa [#allocation13 + $0x1], 0  ;;  %s1748_s21 = smov 0   ;;  %s1750_s22 = smov 0  }
  0x10   :  { %s1752_s23 = smov 0   ;;  %s1754_s24 = smov 0  }
  0x11   :  { %s1756_s25 = smov 0   ;;  %s1758_s26 = smov 0  }
  0x12   :  { %s1760_s27 = smov 0   ;;  %s1762_s28 = smov 0  }
  0x13   :  { %s1764_s29 = smov 0   ;;  %s1766_s30 = smov 0  }
  0x14   :  { %s1768_s7 = smov 0   ;;  %s1770_s8 = smov 0  }
  0x15   :  { %s1772_s9 = smov 0   ;;  %s1774_s10 = smov 0  }
  0x16 LB: > { %2306 = sst [smem:[#allocation19_spill]] %s1663_s25  ;;  %p2277_p0 = scmp.eq.s32.totalorder %s1699_s10, 0  ;;  %s1699_s10 = sphi %s1774_s10, %s32_s10   ;;  %s1695_s9 = sphi %s1772_s9, %s2377_s9   ;;  %s1691_s8 = sphi %s1770_s8, %s2376_s8   ;;  %s1687_s7 = sphi %s1768_s7, %s2375_s7   ;;  %s1683_s30 = sphi %s1766_s30, %s2374_s30   ;;  %s1679_s29 = sphi %s1764_s29, %s2365_s29   ;;  %s1675_s28 = sphi %s1762_s28, %s2364_s28   ;;  %s1671_s27 = sphi %s1760_s27, %s2363_s27   ;;  %s1667_s26 = sphi %s1758_s26, %s2373_s26   ;;  %s1663_s25 = sphi %s1756_s25, %s2372_s25   ;;  %s1659_s24 = sphi %s1754_s24, %s2361_s24   ;;  %s1655_s23 = sphi %s1752_s23, %s2371_s23   ;;  %s1651_s22 = sphi %s1750_s22, %s2370_s22   ;;  %s1647_s21 = sphi %s1748_s21, %s2369_s21  }
  0x17   : > { %2307 = sst [smem:[#allocation20_spill]] %s1675_s28  ;;  %p84_p1 = scmp.ne.s32.totalorder %s1667_s26, %s1663_s25 }
  0x18   : > { %2308 = sst [smem:[#allocation21_spill]] %s1679_s29  ;;  %p2276_p2 = scmp.lt.s32.totalorder %s1699_s10, 8 }
  0x19   : > { %2309 = sst [smem:[#allocation22_spill]] %s1683_s30  ;;  %s2275_s12 = sand.u32 1, %s1699_s10  }
  0x1a   : > { %2310 = sst [smem:[#allocation23_spill]] %s1687_s7  ;;  %p86_p3 = por %p84_p1, %p2277_p0 }
  0x1b   : > { %2311 = sst [smem:[#allocation24_spill]] %s1695_s9  ;;  %s2272_s13 = sand.u32 1, %s1667_s26  }
  0x1c   : > { %s1828_s14 = sshll.u32 %s1691_s8, 9  ;;  %s1832_s15 = sshll.u32 %s2272_s13, 5 }
  0x1d   : > { %s2312_s1 = sld [smem:[#allocation34_spill]]  ;;  %p1842_p4 = pnand %p2276_p2, %p86_p3 }
  0x1e   : > { %s270_s20 = scalar_lea.vmem [#allocation5], %s1832_s15  ;;  %s1852_s16 = scalar_lea.sflag [#allocation6], %s2275_s12 }
  0x1f   : > { %s2313_s19 = scalar_select %p1842_p4, 1, 0 }
  0x20   : > { %s277_s11 = sshll.u32 %s270_s20, 4  ;;  %2314 = sst [smem:[#allocation25_spill]] %s1852_s16  ;;  %s1847_s11 = int_to_ptr.vmem [resolvable:$true] %s277_s11 }
  0x21   : > { %p1858_p7 = pneg %p1842_p4 }
  0x23   : > { %s1838_s18 = scalar_lea.hbm %s2312_s1, %s1828_s14  ;;  %s1368_s20 = scalar_lea.hbm %s2312_s1, 2048 }
  0x24   : > { %s1363_s17 = scalar_lea.hbm %s1838_s18, 512  ;;  %p1369_p10 = scmp.lt.u32.totalorder %s1838_s18, %s2312_s1 }
  0x25   : > { %p1364_p6 = scmp.ne.s32.totalorder %s1838_s18, %s1363_s17  ;;  %p1370_p11 = scmp.lt.u32.totalorder %s1368_s20, %s1363_s17 }
  0x26   : > { %p1372_p13 = scmp.lt.u32.totalorder %s1363_s17, %s1838_s18 }
  0x27   : > { %p1366_p8 = pnand %p1858_p7, %p1364_p6  ;;  %p1371_p12 = por %p1370_p11, %p1369_p10 }
  0x29   : > { %p1367_p9 = pneg %p1366_p8  ;;  %p1373_p1 = por %p1372_p13, %p1371_p12 }
  0x2b   : > { %p1374_p3 = pnand %p1373_p1, %p1367_p9 }
  0x2d   : > { %1377 = shalt.err (!%p1374_p3)
}
  0x2e   : > { %s1378_s12 = scalar_lea.vmem %s1847_s11, 512  ;;  %s1701_s5 = smov [#allocation5]  }
  0x2f   : > { %p1379_p6 = scmp.ne.s32.totalorder %s1847_s11, %s1378_s12  ;;  %s1383_s6 = sshll.u32 %s1701_s5, 4  ;;  %s1384_s6 = int_to_ptr.vmem [resolvable:$false] %s1383_s6 }
  0x30   : > { %s1385_s30 = scalar_lea.vmem %s1384_s6, 1024  ;;  %p1386_p0 = scmp.lt.s32.totalorder %s1847_s11, %s1384_s6 }
  0x31   : > { %p1381_p8 = pnand %p1379_p6, %p1858_p7  ;;  %p1387_p5 = scmp.lt.s32.totalorder %s1385_s30, %s1378_s12 }
  0x33   : > { %p1382_p2 = pneg %p1381_p8  ;;  %p1388_p10 = por %p1387_p5, %p1386_p0 }
  0x35   : > { %p1389_p11 = pnand %p1388_p10, %p1382_p2 }
  0x37   : > { %1392 = shalt.err (!%p1389_p11)
}
  0x38   : > { %s2278_s7 = smov 128   ;;  %s2280_s17 = smov 8  }
  0x39   : > { %1223 = dma.hbm_to_vmem [thread:$0]  (!%p1842_p4), %s1838_s18, 512, %s1847_s11, %s1852_s16, %s2278_s7, %s2278_s7, %s2280_s17  }
  0x3a   : > { %p344_p0 = scmp.lt.s32.totalorder %s1699_s10, 9  ;;  %s2316_s3 = sld [smem:[#allocation35_spill]] }
  0x3b   : > { %p2317_p2 = scmp.ge.s32.totalorder %s1699_s10, 1  ;;  %s312_s30 = scalar_lea.vmem [#allocation8], %s1832_s15 }
  0x3c   : > { %s319_s1 = sshll.u32 %s312_s30, 4  ;;  %s2319_s11 = sand.u32 1, %s1699_s10   ;;  %s1899_s1 = int_to_ptr.vmem [resolvable:$true] %s319_s1 }
  0x3d   : > { %p1894_p5 = pnand %p2317_p2, %p344_p0  ;;  %s1903_s18 = scalar_lea.sflag [#allocation9], %s2319_s11 }
  0x3f   : > { %s2318_s6 = scalar_select %p1894_p5, 1, 0 }
  0x40   : > { %s1890_s5 = scalar_lea.hbm %s2316_s3, %s1828_s14  ;;  %s1398_s17 = scalar_lea.hbm %s2316_s3, 2048 }
  0x41   : > { %s1393_s7 = scalar_lea.hbm %s1890_s5, 512  ;;  %p1399_p1 = scmp.lt.u32.totalorder %s1890_s5, %s2316_s3 }
  0x42   : > { %p1394_p9 = scmp.ne.s32.totalorder %s1890_s5, %s1393_s7  ;;  %p1400_p3 = scmp.lt.u32.totalorder %s1398_s17, %s1393_s7 }
  0x43   : > { %p1402_p8 = scmp.lt.u32.totalorder %s1393_s7, %s1890_s5 }
  0x44   : > { %p1396_p12 = pnand %p1394_p9, %p1858_p7  ;;  %p1401_p6 = por %p1400_p3, %p1399_p1 }
  0x46   : > { %p1397_p13 = pneg %p1396_p12  ;;  %p1403_p10 = por %p1402_p8, %p1401_p6 }
  0x48   : > { %p1404_p11 = pnand %p1403_p10, %p1397_p13 }
  0x4a   : > { %1407 = shalt.err (!%p1404_p11)
}
  0x4b   : > { %s1408_s30 = scalar_lea.vmem %s1899_s1, 512  ;;  %s1704_s11 = smov [#allocation8]  }
  0x4c   : > { %p1409_p0 = scmp.ne.s32.totalorder %s1899_s1, %s1408_s30  ;;  %s1413_s12 = sshll.u32 %s1704_s11, 4  ;;  %s1414_s12 = int_to_ptr.vmem [resolvable:$false] %s1413_s12 }
  0x4d   : > { %s1415_s4 = scalar_lea.vmem %s1414_s12, 1024  ;;  %p1416_p12 = scmp.lt.s32.totalorder %s1899_s1, %s1414_s12 }
  0x4e   : > { %p1411_p2 = pnand %p1409_p0, %p1858_p7  ;;  %p1417_p5 = scmp.lt.s32.totalorder %s1415_s4, %s1408_s30 }
  0x50   : > { %p1412_p9 = pneg %p1411_p2  ;;  %p1418_p1 = por %p1417_p5, %p1416_p12 }
  0x52   : > { %p1419_p3 = pnand %p1418_p1, %p1412_p9 }
  0x54   : > { %1422 = shalt.err (!%p1419_p3)
}
  0x55   : > { %s2320_s16 = smov 8   ;;  %s2321_s7 = smov 128  }
  0x56   : > { %1229 = dma.hbm_to_vmem [thread:$0]  (!%p1842_p4), %s1890_s5, 512, %s1899_s1, %s1903_s18, %s2321_s7, %s2321_s7, %s2320_s16  }
  0x57   : > { %s1931_s17 = sadd.s32 4294967295, %s1699_s10   ;;  %s41_s30 = sadd.s32 1, %s1691_s8 }
  0x58   : > { %2322 = sst [smem:[#allocation26_spill]] %s1931_s17  ;;  %p42_p5 = scmp.ge.s32.totalorder %s41_s30, 4 }
  0x59   : > { %s44_s11 = sadd.s32 1, %s1695_s9  ;;  %s51_s12 = sadd.s32 1, %s1679_s29 }
  0x5a   : > { %p58_p13 = scmp.ne.s32.totalorder %s1679_s29, %s1675_s28  ;;  %s2379_s30 = smov (%p42_p5, %s41_s30), 0 }
  0x5b   : > { %2323 = sst [smem:[#allocation27_spill]] %s2379_s30  ;;  %s2381_s11 = smov (!%p42_p5, %s44_s11), %s1695_s9 }
  0x5c   : > { %p2324_p6 = scmp.eq.s32.totalorder %s1699_s10, 0  ;;  %p64_p10 = scmp.ne.s32.totalorder %s1675_s28, %s1671_s27 }
  0x5d   : > { %p46_p11 = scmp.ge.s32.totalorder %s2381_s11, 2  ;;  %p65_p0 = scmp.eq.s32.totalorder %s1931_s17, 0 }
  0x5e   : > { %p1944_p8 = por %p2324_p6, %p58_p13  ;;  %s74_s5 = ssub.s32 %s1691_s8, %s2379_s30 }
  0x5f   : > { %p90_p2 = scmp.ne.s32.totalorder %s1663_s25, %s1659_s24  ;;  %s2383_s11 = smov (%p46_p11, %s2381_s11), 0 }
  0x60   : > { %2326 = sst [smem:[#allocation28_spill]] %s2383_s11  ;;  %p1957_p9 = por %p65_p0, %p64_p10 }
  0x61   : > { %p75_p12 = scmp.eq.s32.totalorder %s74_s5, 0  ;;  %s48_s27 = ssub.s32 %s1695_s9, %s2383_s11 }
  0x62   : > { %s2327_s4 = scalar_select %p1957_p9, 1, 0 }
  0x63   : > { %p1963_p1 = por %p90_p2, %p65_p0  ;;  %p49_p3 = scmp.eq.s32.totalorder %s48_s27, 0 }
  0x64   : > { %2328 = sst [smem:[#allocation29_spill]] %s2327_s4  ;;  %s180_s24 = sor.u32 %s74_s5, %s48_s27 }
  0x65   : > { %s2329_s20 = scalar_select %p1963_p1, 1, 0 }
  0x66   : > { %s2331_s3 = sadd.s32 1, %s1667_s26  ;;  %p181_p5 = scmp.eq.s32.totalorder %s180_s24, 0 }
  0x67   : > { %2330 = sst [smem:[#allocation30_spill]] %s2329_s20  ;;  %s183_s28 = sadd.s32 1, %s1655_s23 }
  0x68   : > { %s1970_s30 = scalar_select %p75_p12, %s1667_s26, %s2331_s3  }
  0x69   : > { %s1973_s25 = scalar_select %p49_p3, %s1679_s29, %s51_s12  }
  0x6a   : > { %2332 = sst [smem:[#allocation31_spill]] %s1970_s30  ;;  %p193_p13 = scmp.ne.s32.totalorder %s1655_s23, %s1651_s22 }
  0x6b   : > { %2333 = sst [smem:[#allocation32_spill]] %s1973_s25  ;;  %p194_p6 = scmp.eq.s32.totalorder %s1931_s17, 7 }
  0x6c   : > { %s1980_s11 = scalar_select %p181_p5, %s1655_s23, %s183_s28  }
  0x6d   : > { %p1982_p10 = por %p194_p6, %p193_p13  ;;  %p199_p11 = scmp.ne.s32.totalorder %s1651_s22, %s1647_s21 }
  0x6e   : > { %2334 = sst [smem:[#allocation33_spill]] %s1980_s11  ;;  %s2336_s5 = sadd.s32 4294967294, %s1699_s10  }
  0x6f   : > { %s2335_s20 = scalar_select %p1982_p10, 1, 0 }
  0x70   : > { %p200_p0 = scmp.eq.s32.totalorder %s2336_s5, 7  ;;  %s248_s3 = sand.u32 1, %s1679_s29  }
  0x71   : > { %s1086_s12 = sshll.u32 %s248_s3, 3  ;;  %s1087_s24 = sshll.u32 %s1695_s9, 7 }
  0x72   : > { %p1991_p2 = por %p200_p0, %p199_p11  ;;  %s252_s25 = scalar_lea.vmem [#allocation2], %s1086_s12 }
  0x73   : > { %s259_s30 = sshll.u32 %s252_s25, 4  ;;  %s1999_s28 = scalar_lea.hbm %s2265_s0, %s1087_s24  ;;  %s2001_s30 = int_to_ptr.vmem [resolvable:$true] %s259_s30 }
  0x74   : > { %s2337_s27 = scalar_select %p1991_p2, 1, 0 }
  0x75   : > { %p2338_p12 = scmp.lt.s32.totalorder %s1699_s10, 8  ;;  %s2015_s25 = scalar_lea.hbm %s2267_s2, %s1828_s14 }
  0x76   : > { %s291_s17 = scalar_lea.vmem [#allocation7], %s1832_s15  ;;  %s249_s24 = scalar_lea.sflag [#allocation3], %s248_s3 }
  0x77   : > { %p2007_p3 = pnand %p2338_p12, %p1944_p8  ;;  %s298_s4 = sshll.u32 %s291_s17, 4  ;;  %s2018_s4 = int_to_ptr.vmem [resolvable:$true] %s298_s4 }
  0x78   : > { %s1423_s29 = scalar_lea.hbm %s1999_s28, 128  ;;  %s1428_s9 = scalar_lea.hbm %s2265_s0, 256 }
  0x79   : > { %p1424_p5 = scmp.ne.s32.totalorder %s1999_s28, %s1423_s29  ;;  %p1425_p13 = pneg %p2007_p3 }
  0x7a   : > { %p1429_p11 = scmp.lt.u32.totalorder %s1999_s28, %s2265_s0  ;;  %p1430_p0 = scmp.lt.u32.totalorder %s1428_s9, %s1423_s29 }
  0x7b   : > { %p1426_p8 = pnand %p1425_p13, %p1424_p5  ;;  %p1432_p2 = scmp.lt.u32.totalorder %s1423_s29, %s1999_s28 }
  0x7c   : > { %p1431_p12 = por %p1430_p0, %p1429_p11 }
  0x7d   : > { %p1427_p6 = pneg %p1426_p8 }
  0x7e   : > { %p1433_p10 = por %p1432_p2, %p1431_p12 }
  0x80   : > { %p1434_p1 = pnand %p1433_p10, %p1427_p6 }
  0x82   : > { %1437 = shalt.err (!%p1434_p1)
}
  0x83   : > { %s1438_s15 = scalar_lea.vmem %s2001_s30, 128  ;;  %s1705_s11 = smov [#allocation2]  }
  0x84   : > { %p1439_p5 = scmp.ne.s32.totalorder %s2001_s30, %s1438_s15  ;;  %s1443_s3 = sshll.u32 %s1705_s11, 4  ;;  %s1444_s3 = int_to_ptr.vmem [resolvable:$false] %s1443_s3 }
  0x85   : > { %s1445_s17 = scalar_lea.vmem %s1444_s3, 256  ;;  %p1446_p4 = scmp.lt.s32.totalorder %s2001_s30, %s1444_s3 }
  0x86   : > { %p1441_p8 = pnand %p1439_p5, %p1425_p13  ;;  %p1447_p11 = scmp.lt.s32.totalorder %s1445_s17, %s1438_s15 }
  0x88   : > { %p1442_p9 = pneg %p1441_p8  ;;  %p1448_p0 = por %p1447_p11, %p1446_p4 }
  0x8a   : > { %p1449_p2 = pnand %p1448_p0, %p1442_p9 }
  0x8c   : > { %1452 = shalt.err (!%p1449_p2)
}
  0x8d   : > { %1220 = dma.hbm_to_vmem [thread:$0]  (!%p2007_p3), %s1999_s28, 128, %s2001_s30, %s249_s24  }
  0x8e   : > { %s1453_s29 = scalar_lea.hbm %s2015_s25, 512  ;;  %s1458_s12 = scalar_lea.hbm %s2267_s2, 2048 }
  0x8f   : > { %p1454_p1 = scmp.ne.s32.totalorder %s2015_s25, %s1453_s29  ;;  %p1459_p4 = scmp.lt.u32.totalorder %s2015_s25, %s2267_s2 }
  0x90   : > { %p1460_p9 = scmp.lt.u32.totalorder %s1458_s12, %s1453_s29  ;;  %p1462_p12 = scmp.lt.u32.totalorder %s1453_s29, %s2015_s25 }
  0x91   : > { %p1456_p10 = pnand %p1454_p1, %p1858_p7 }
  0x92   : > { %p1461_p6 = por %p1460_p9, %p1459_p4 }
  0x93   : > { %p1457_p13 = pneg %p1456_p10 }
  0x94   : > { %p1463_p5 = por %p1462_p12, %p1461_p6 }
  0x96   : > { %p1464_p8 = pnand %p1463_p5, %p1457_p13 }
  0x98   : > { %1467 = shalt.err (!%p1464_p8)
}
  0x99   : > { %s1468_s30 = scalar_lea.vmem %s2018_s4, 512  ;;  %s1706_s28 = smov [#allocation7]  }
  0x9a   : > { %p1469_p3 = scmp.ne.s32.totalorder %s2018_s4, %s1468_s30  ;;  %s1473_s5 = sshll.u32 %s1706_s28, 4  ;;  %s1474_s5 = int_to_ptr.vmem [resolvable:$false] %s1473_s5 }
  0x9b   : > { %s1475_s24 = scalar_lea.vmem %s1474_s5, 1024  ;;  %p1476_p2 = scmp.lt.s32.totalorder %s2018_s4, %s1474_s5 }
  0x9c   : > { %p1471_p11 = pnand %p1469_p3, %p1858_p7  ;;  %p1477_p1 = scmp.lt.s32.totalorder %s1475_s24, %s1468_s30 }
  0x9e   : > { %p1472_p0 = pneg %p1471_p11  ;;  %p1478_p10 = por %p1477_p1, %p1476_p2 }
  0xa0   : > { %p1479_p4 = pnand %p1478_p10, %p1472_p0 }
  0xa2   : > { %1482 = shalt.err (!%p1479_p4)
}
  0xa3   : > { %p2340_p13 = scmp.ne.s32.totalorder %s2313_s19, 0  ;;  %s2341_s11 = sld [smem:[#allocation25_spill]] }
  0xa4   : > { %s1097_s3 = sshll.u32 %s1691_s8, 4  ;;  %s2342_s1 = sld [smem:[#allocation36_spill]] }
  0xa5   : > { %s2343_s12 = sand.u32 1, %s1667_s26  }
  0xa6   : > { %s332_s14 = scalar_lea.vmem [#allocation10], %s2343_s12 }
  0xa7   : > { %s339_s15 = sshll.u32 %s332_s14, 4  ;;  %s340_s15 = int_to_ptr.vmem [resolvable:$true] %s339_s15 }
  0xa9   : > { %1226 = dma.hbm_to_vmem [thread:$0]  (!%p2340_p13), %s2015_s25, 512, %s2018_s4, %s2341_s11, %s2321_s7, %s2321_s7, %s2320_s16  }
  0xaa   : > { %s2074_s9 = scalar_lea.hbm %s2342_s1, %s1097_s3  ;;  %s1488_s25 = scalar_lea.hbm %s2342_s1, 64 }
  0xab   : > { %s1483_s30 = scalar_lea.hbm %s2074_s9, 16  ;;  %p1489_p5 = scmp.lt.u32.totalorder %s2074_s9, %s2342_s1 }
  0xac   : > { %p1484_p9 = scmp.ne.s32.totalorder %s2074_s9, %s1483_s30  ;;  %p1490_p8 = scmp.lt.u32.totalorder %s1488_s25, %s1483_s30 }
  0xad   : > { %p1492_p11 = scmp.lt.u32.totalorder %s1483_s30, %s2074_s9 }
  0xae   : > { %p1486_p6 = pnand %p1484_p9, %p1858_p7  ;;  %p1491_p3 = por %p1490_p8, %p1489_p5 }
  0xb0   : > { %p1487_p12 = pneg %p1486_p6  ;;  %p1493_p0 = por %p1492_p11, %p1491_p3 }
  0xb2   : > { %p1494_p2 = pnand %p1493_p0, %p1487_p12 }
  0xb4   : > { %1497 = shalt.err (!%p1494_p2)
}
  0xb5   : > { %s1498_s5 = scalar_lea.vmem %s340_s15, 16  ;;  %s1707_s24 = smov [#allocation10]  }
  0xb6   : > { %p1499_p1 = scmp.ne.s32.totalorder %s340_s15, %s1498_s5  ;;  %s1503_s11 = sshll.u32 %s1707_s24, 4  ;;  %s1504_s11 = int_to_ptr.vmem [resolvable:$false] %s1503_s11 }
  0xb7   : > { %s1505_s3 = scalar_lea.vmem %s1504_s11, 32  ;;  %p1506_p9 = scmp.lt.s32.totalorder %s340_s15, %s1504_s11 }
  0xb8   : > { %p1501_p10 = pnand %p1499_p1, %p1858_p7  ;;  %p1507_p6 = scmp.lt.s32.totalorder %s1505_s3, %s1498_s5 }
  0xba   : > { %p1502_p4 = pneg %p1501_p10  ;;  %p1508_p13 = por %p1507_p6, %p1506_p9 }
  0xbc   : > { %p1509_p5 = pnand %p1508_p13, %p1502_p4 }
  0xbe   : > { %1512 = shalt.err (!%p1509_p5)
}
  0xbf   : > { %p2344_p8 = scmp.ne.s32.totalorder %s2313_s19, 0  ;;  %p2345_p12 = scmp.ne.s32.totalorder %s2318_s6, 0 }
  0xc0   : > { %s2346_s13 = sld [smem:[#allocation20_spill]] (!%p2345_p12)  ;;  %s2347_s17 = sld [smem:[#allocation29_spill]] (!%p2345_p12) }
  0xc1   : > { %1232 = dma.hbm_to_vmem [thread:$0]  (!%p2344_p8), %s2074_s9, 16, %s340_s15, %s1903_s18  }
  0xc2   : > { %348 = sbr.rel (%p2345_p12) target bundleno = 1197 (0x4ad), region = 40 }
  0xc6   : > { %s350_s29 = sand.u32 (!%p2345_p12), 1, %s2346_s13   ;;  %p2348_p7 = scmp.ne.s32.totalorder (!%p2345_p12), %s2347_s17, 0 }
  0xc7   : > { %s2099_s12 = sshll.u32 (!%p2345_p12), %s350_s29, 3  ;;  %s351_s14 = scalar_lea.sflag (!%p2345_p12), [#allocation3], %s350_s29 }
  0xc8   : > { %s354_s30 = scalar_lea.vmem (!%p2345_p12), [#allocation2], %s2099_s12 }
  0xc9   : > { %1626 = dma.done.wait (%p2348_p7), %s351_s14, 128  }
  0xca   : > { %1628 = vsyncadd (%p2348_p7), %s351_s14, 4294967168  ;;  %s2349_s19 = sld [smem:[#allocation26_spill]]  ;;  %s2350_s16 = sld [smem:[#allocation19_spill]] }
  0xcb   : > { %s2351_s18 = sld [smem:[#allocation30_spill]] }
  0xd0   : > { %s359_s9 = sand.u32 1, %s2349_s19   ;;  %s361_s6 = sand.u32 1, %s2350_s16  }
  0xd1   : > { %s1100_s15 = sshll.u32 %s361_s6, 5  ;;  %s360_s7 = scalar_lea.sflag [#allocation6], %s359_s9 }
  0xd2   : > { %s363_s25 = scalar_lea.vmem [#allocation5], %s1100_s15  ;;  %p2352_p13 = scmp.ne.s32.totalorder %s2351_s18, 0 }
  0xd4   : > { %1630 = dma.done.wait (%p2352_p13), %s360_s7, 1024  }
  0xd5   : > { %1632 = vsyncadd (%p2352_p13), %s360_s7, 4294966272  ;;  %s372_s4 = scalar_lea.vmem [#allocation7], %s1100_s15  ;;  %s378_s28 = scalar_lea.sflag [#allocation9], %s359_s9 }
  0xd6   : > { %s2114_s5 = scalar_lea.vmem [#allocation8], %s1100_s15 }
  0xd7   : > { %1634 = dma.done.wait (%p2352_p13), %s378_s28, 528  }
  0xd8   : > { %1636 = vsyncadd (%p2352_p13), %s378_s28, 4294966768  ;;  %v1708_v0 = vmov 0.0|0.0   ;;  %vm1709_vm0 = vmmov 0   ;;  %v1710_v1 = vmov 0.0   ;;  %v521_v2 = vld [vmem:[%s372_s4] sm:$0xff]  ;;  %v522_v3 = vld [vmem:[%s372_s4 + $0x8] sm:$0xff] }
  0xd9   : > { %1191 = vmatprep.subr.bf16.mxu1 %v1708_v0  ;;  %1185 = vmatprep.subr.bf16.mxu0 %v1708_v0  ;;  %v443_v4 = vld [vmem:[%s363_s25] sm:$0xff]  ;;  %v1192_v5 = vpack.c.bf16 %v522_v3, %v521_v2  ;;  %v444_v6 = vld [vmem:[%s363_s25 + $0x8] sm:$0xff]  ;;  %v523_v7 = vld [vmem:[%s372_s4 + $0x10] sm:$0xff]  ;;  %vm447_vm1 = vcmask 261120   ;;  %vm676_vm2 = vcmask 64512   ;;  %s2353_s24 = sld [smem:[#allocation23_spill]] }
  0xda   : > { %1161 = vmatprep.mubr.msk.f32.mxu1 %vm1709_vm0, %v1710_v1  ;;  %1150 = vmatprep.mubr.msk.f32.mxu0 %vm1709_vm0, %v1710_v1  ;;  %v524_v8 = vld [vmem:[%s372_s4 + $0x18] sm:$0xff]  ;;  %v1186_v9 = vpack.c.bf16 %v444_v6, %v443_v4  ;;  %v445_v10 = vld [vmem:[%s363_s25 + $0x10] sm:$0xff]  ;;  %v595_v19 = vld [vmem:[%s2114_s5] sm:$0xff]  ;;  %s2354_s11 = sld [smem:[#allocation22_spill]]  ;;  %s389_s3 = scalar_lea.vmem [#allocation10], %s361_s6 }
  0xdb   : > { %v446_v11 = vld [vmem:[%s363_s25 + $0x18] sm:$0xff]  ;;  %1193 = vmatpush3.bf16.msra.mxu1 %v1192_v5  ;;  %v1195_v12 = vpack.c.bf16 %v524_v8, %v523_v7  ;;  %v596_v20 = vld [vmem:[%s2114_s5 + $0x8] sm:$0xff]  ;;  %v597_v21 = vld [vmem:[%s2114_s5 + $0x10] sm:$0xff]  ;;  %s2142_s13 = sand.u32 1, %s1651_s22   ;;  %s2355_s18 = sld [smem:[#allocation38_spill]] }
  0xdc   : > { %1187 = vmatpush3.bf16.msra.mxu0 %v1186_v9  ;;  %1194 = vmatprep.subr.bf16.mxu1 %v1708_v0  ;;  %v1189_v13 = vpack.c.bf16 %v446_v11, %v445_v10  ;;  %v442_v14 = vld [vmem:[%s354_s30] sm:$0xff]  ;;  %v1198_v22 = vpack.c.bf16 %v596_v20, %v595_v19  ;;  %s1103_s17 = sshll.u32 %s2142_s13, 3  ;;  %s852_s15 = scalar_lea.sflag [#allocation13], %s2142_s13 }
  0xdd   : > { %1188 = vmatprep.subr.bf16.mxu0 %v1708_v0  ;;  %v598_v23 = vld [vmem:[%s2114_s5 + $0x18] sm:$0xff]  ;;  %v1107_v38 = vld [vmem:[%s389_s3] ss:$0 sm:$0xff]  ;;  %s441_s29 = scalar_lea.vmem [#allocation12], %s1103_s17  ;;  %p2356_p11 = scmp.ne.s32.totalorder %s2335_s20, 0 }
  0xde   : > { %v1201_v24 = vpack.c.bf16 %v598_v23, %v597_v21  ;;  %s882_s6 = sshll.u32 %s441_s29, 4  ;;  %s1711_s25 = smov [#allocation12]   ;;  %s883_s6 = int_to_ptr.vmem [resolvable:$true] %s882_s6 }
  0xdf   : > { %1196 = vmatpush3.bf16.msra.mxu1 %v1195_v12  ;;  %s1114_s12 = sshll.u32 %s2353_s24, 2  ;;  %s1513_s7 = scalar_lea.vmem %s883_s6, 128 }
  0xe0   : > { %1190 = vmatpush3.bf16.msra.mxu0 %v1189_v13  ;;  %1175 = vmatprep.subr.mxu1 %v1710_v1  ;;  %s2151_s14 = sadd.s32 %s2354_s11, %s1114_s12  ;;  %p1514_p3 = scmp.ne.s32.totalorder %s883_s6, %s1513_s7 }
  0xe1   : > { %1197 = vmatprep.subr.bf16.mxu0 %v1708_v0  ;;  %s1115_s30 = sshll.u32 %s2151_s14, 7  ;;  %s1517_s4 = sshll.u32 %s1711_s25, 4  ;;  %s1518_s4 = int_to_ptr.vmem [resolvable:$false] %s1517_s4 }
  0xe2   : > { %1162 = vmatmul.mubr.msk.f32.vlgmr.msra.gmra.mrb[0].mxu1 %vm447_vm1, %v442_v14  ;;  %s2159_s9 = scalar_lea.hbm %s2355_s18, %s1115_s30  ;;  %p1515_p0 = pnand %p1514_p3, %p2356_p11 }
  0xe3   : > { %1151 = vmatmul.mubr.msk.f32.vlgmr.msra.gmra.mrb[0].mxu0 %vm447_vm1, %v442_v14  ;;  %1177 = vmatprep.mubr.msk.f32.mxu1 %vm1709_vm0, %v1710_v1  ;;  %s1519_s28 = scalar_lea.vmem %s1518_s4, 256  ;;  %p1520_p1 = scmp.lt.s32.totalorder %s883_s6, %s1518_s4 }
  0xe4   : > { %1172 = vmatprep.mubr.msk.f32.mxu0 %vm1709_vm0, %v1710_v1  ;;  %1199 = vmatpush3.bf16.msra.mxu0 %v1198_v22  ;;  %p1516_p2 = pneg %p1515_p0  ;;  %p1521_p10 = scmp.lt.s32.totalorder %s1519_s28, %s1513_s7 }
  0xe5   : > { %1200 = vmatprep.subr.bf16.mxu0 %v1708_v0 }
  0xe6   : > { %p1522_p4 = por %p1521_p10, %p1520_p1 }
  0xe8   : > { %1202 = vmatpush3.bf16.msra.mxu0 %v1201_v24  ;;  %p1523_p9 = pnand %p1522_p4, %p1516_p2 }
  0xeb   : > { %1173 = vmatmul.mubr.msk.f32.vlgmr.msra.gmra.mrb[2].mxu0 %vm447_vm1, %v442_v14 }
 0x1b5   : > { %v591_v15 = vpop.f32.mrb[0].mxu1 }
 0x1b6   : > { %v1163_v16 = vpop.f32.mrb[1].mxu1  ;;  %1176 = vmatpush3.xpose.msk.msra.mxu1 %vm676_vm2, %v591_v15  ;;  %v517_v17 = vpop.f32.mrb[0].mxu0 }
 0x1b7   : > { %v1152_v18 = vpop.f32.mrb[1].mxu0  ;;  %1180 = vmatprep.subr.mxu1 %v1710_v1 }
 0x1b9   : > { %1178 = vmatmul.mubr.msk.f32.vlgmr.msra.gmra.mrb[2].mxu1 %vm676_vm2, %v517_v17 }
 0x1ba   : > { %1182 = vmatprep.mubr.msk.f32.mxu1 %vm1709_vm0, %v1710_v1 }
 0x1be   : > { %v672_v37 = vpop.f32.mrb[2].mxu0 }
 0x1bf   : > { %v1174_v39 = vpop.f32.mrb[3].mxu0  ;;  %v673_v40 = vadd.f32 %v1107_v38, %v672_v37 }
 0x1c1   : > { %1181 = vmatpush3.msra.mxu1 %v673_v40 }
 0x28c   : > { %v749_v25 = vpop.f32.mrb[2].mxu1 }
 0x28d   : > { %v1179_v26 = vpop.f32.mrb[3].mxu1  ;;  %v753_v27 = vsel %vm676_vm2, %v749_v25, 0.0  ;;  %v760_v28 = vsel %vm676_vm2, %v749_v25, -inf }
 0x28e   : > { %754 = vadd.xlane.f32.xlu0 %v753_v27 }
 0x292   : > { %761 = vmax.xlane.f32.xlu0 %v760_v28 }
 0x31b   : > { %v755_v29 = vpop.xlane.xlu0 %754 }
 0x31c   : > { %v757_v30 = vmul.f32 0.125, %v755_v29 }
 0x31e   : > { %vm758_vm3 = vcmp.ge.f32.partialorder %v749_v25, %v757_v30 }
 0x31f   : > { %v759_v31 = vsel %vm758_vm3, %v749_v25, -1e+10  ;;  %v762_v32 = vpop.xlane.xlu0 %761 }
 0x320   : > { %v763_v33 = vsub.f32 %v759_v31, %v762_v32 }
 0x322   : > { %v764_v34 = vmul.f32 1.442695, %v763_v33 }
 0x324   : > { %1359 = vpow2.f32 %v764_v34 }
 0x32e   : > { %v1360_v35 = vpop.eup %1359 }
 0x32f   : > { %v766_v36 = vsel %vm676_vm2, %v1360_v35, 0.0 }
 0x330   : > { %767 = vadd.xlane.f32.xlu1 %v766_v36 }
 0x3bd   : > { %v768_v41 = vpop.xlane.xlu1 %767 }
 0x3be   : > { %1361 = vrcp.f32 %v768_v41 }
 0x3c8   : > { %v1362_v42 = vpop.eup %1361 }
 0x3c9   : > { %v770_v43 = vmul.f32 %v1362_v42, %v1360_v35 }
 0x3cb   : > { %1183 = vmatmul.mubr.msk.f32.vlgmr.msra.gmra.mrb[4].mxu1 %vm676_vm2, %v770_v43  ;;  %771 = vst.msk [vmem:[%s441_s29] sm:$0xff] %vm676_vm2, %v770_v43 }
 0x3cc   : > { %1526 = shalt.err (!%p1523_p9)
}
 0x3cd   : > { %s1527_s5 = scalar_lea.hbm %s2159_s9, 128  ;;  %s1531_s3 = scalar_lea.hbm %s2355_s18, 1024 }
 0x3ce   : > { %p1528_p6 = scmp.ne.s32.totalorder %s2159_s9, %s1527_s5  ;;  %p1532_p12 = scmp.lt.u32.totalorder %s2159_s9, %s2355_s18 }
 0x3cf   : > { %p1533_p7 = scmp.lt.u32.totalorder %s1531_s3, %s1527_s5  ;;  %p1535_p3 = scmp.lt.u32.totalorder %s1527_s5, %s2159_s9 }
 0x3d0   : > { %p1529_p5 = pnand %p1528_p6, %p2356_p11 }
 0x3d1   : > { %p1534_p13 = por %p1533_p7, %p1532_p12 }
 0x3d2   : > { %p1530_p8 = pneg %p1529_p5 }
 0x3d3   : > { %p1536_p0 = por %p1535_p3, %p1534_p13 }
 0x3d5   : > { %p1537_p2 = pnand %p1536_p0, %p1530_p8 }
 0x3d7   : > { %1540 = shalt.err (!%p1537_p2)
}
 0x3d8   : > { %1214 = dma.vmem_to_hbm [thread:$0]  (%p2356_p11), %s883_s6, 128, %s2159_s9, %s852_s15  }
 0x3d9   : > { %s434_s19 = scalar_lea.vmem [#allocation11], %s1103_s17  ;;  %s2357_s4 = sld [smem:[#allocation37_spill]] }
 0x3da   : > { %s867_s16 = sshll.u32 %s434_s19, 4  ;;  %s847_s5 = scalar_lea.sflag [#allocation4], %s2142_s13  ;;  %s2188_s16 = int_to_ptr.vmem [resolvable:$true] %s867_s16 }
 0x3db   : > { %s1541_s9 = scalar_lea.vmem %s2188_s16, 128  ;;  %s1712_s17 = smov [#allocation11]  }
 0x3dc   : > { %p1542_p1 = scmp.ne.s32.totalorder %s2188_s16, %s1541_s9  ;;  %s1545_s14 = sshll.u32 %s1712_s17, 4  ;;  %s1546_s14 = int_to_ptr.vmem [resolvable:$false] %s1545_s14 }
 0x3dd   : > { %p1548_p9 = scmp.lt.s32.totalorder %s2188_s16, %s1546_s14 }
 0x3de   : > { %p1543_p10 = pnand %p1542_p1, %p2356_p11 }
 0x3df   : > { %s2186_s28 = scalar_lea.hbm %s2357_s4, %s1115_s30  ;;  %s1547_s30 = scalar_lea.vmem %s1546_s14, 256 }
 0x3e0   : > { %p1544_p4 = pneg %p1543_p10  ;;  %p1549_p6 = scmp.lt.s32.totalorder %s1547_s30, %s1541_s9 }
 0x3e2   : > { %p1550_p5 = por %p1549_p6, %p1548_p9 }
 0x3e4   : > { %p1551_p8 = pnand %p1550_p5, %p1544_p4 }
 0x49e   : > { %v841_v44 = vpop.f32.mrb[4].mxu1 }
 0x49f   : > { %845 = vst.msk [vmem:[%s434_s19] sm:$0xff] %vm676_vm2, %v841_v44  ;;  %v1184_v45 = vpop.f32.mrb[5].mxu1 }
 0x4a0   : > { %1554 = shalt.err (!%p1551_p8)
}
 0x4a1   : > { %s1555_s13 = scalar_lea.hbm %s2186_s28, 128  ;;  %s1559_s24 = scalar_lea.hbm %s2357_s4, 1024 }
 0x4a2   : > { %p1556_p12 = scmp.ne.s32.totalorder %s2186_s28, %s1555_s13  ;;  %p1560_p3 = scmp.lt.u32.totalorder %s2186_s28, %s2357_s4 }
 0x4a3   : > { %p1561_p0 = scmp.lt.u32.totalorder %s1559_s24, %s1555_s13  ;;  %p1563_p1 = scmp.lt.u32.totalorder %s1555_s13, %s2186_s28 }
 0x4a4   : > { %p1557_p7 = pnand %p1556_p12, %p2356_p11 }
 0x4a5   : > { %p1562_p2 = por %p1561_p0, %p1560_p3 }
 0x4a6   : > { %p1558_p13 = pneg %p1557_p7 }
 0x4a7   : > { %p1564_p10 = por %p1563_p1, %p1562_p2 }
 0x4a9   : > { %p1565_p4 = pnand %p1564_p10, %p1558_p13 }
 0x4ab   : > { %1568 = shalt.err (!%p1565_p4)
}
 0x4ac   : > { %1213 = dma.vmem_to_hbm [thread:$0]  (%p2356_p11), %s2188_s16, 128, %s2186_s28, %s847_s5  }
 0x4ad PF: > { %p1241_p9 = scmp.ge.s32.totalorder %s1699_s10, 2  ;;  %s894_s29 = sand.u32 1, %s1647_s21  }
 0x4ae   : > { %p2358_p6 = scmp.ne.s32.totalorder %s2337_s27, 0  ;;  %s895_s12 = scalar_lea.sflag [#allocation4], %s894_s29 }
 0x4b0   : > { %p1234_p5 = pnand %p1241_p9, %p2358_p6 }
 0x4b2   : > { %1638 = dma.done.wait (!%p1234_p5), %s895_s12, 128  }
 0x4b3   : > { %1640 = vsyncadd (!%p1234_p5), %s895_s12, 4294967168  ;;  %s904_s19 = scalar_lea.sflag [#allocation13], %s894_s29 }
 0x4b4   : > { %1642 = dma.done.wait (!%p1234_p5), %s904_s19, 128  }
 0x4b5   : > { %1644 = vsyncadd (!%p1234_p5), %s904_s19, 4294967168  ;;  %s32_s10 = sadd.s32 1, %s1699_s10   ;;  %s2360_s16 = sld [smem:[#allocation33_spill]] }
 0x4b6   : > { %p2218_p8 = scmp.ge.s32.totalorder %s32_s10, 10   ;;  %s2361_s24 = sld [smem:[#allocation19_spill]] }
 0x4b7   : > { %s2362_s7 = sld [smem:[#allocation31_spill]]  ;;  %s2363_s27 = sld [smem:[#allocation20_spill]] }
 0x4b8   : > { %s2364_s28 = sld [smem:[#allocation21_spill]]  ;;  %s2365_s29 = sld [smem:[#allocation32_spill]] }
 0x4b9   : > { %s2366_s5 = sld [smem:[#allocation24_spill]]  ;;  %s2367_s9 = sld [smem:[#allocation27_spill]] }
 0x4ba   : > { %s2368_s17 = sld [smem:[#allocation28_spill]]  ;;  %s2369_s21 = smov %s1651_s22 }
 0x4bb   : > { %s2370_s22 = smov %s1655_s23  ;;  %s2371_s23 = smov %s2360_s16 }
 0x4bc   : > { %s2372_s25 = smov %s1667_s26  ;;  %s2374_s30 = smov %s1691_s8 }
 0x4bd   : > { %s2373_s26 = smov %s2362_s7  ;;  %31 = sbr.rel (!%p2218_p8) target bundleno = 22 (0x16), region = 150 }
 0x4bf   : > { %s2375_s7 = smov %s2366_s5  ;;  %s2376_s8 = smov %s2367_s9 }
 0x4c0   : > { %s2377_s9 = smov %s2368_s17 }
 0x4c4   :  { %909 = vsyncpa [#allocation3], 1 }
 0x4c5   :  { %911 = vsyncpa [#allocation3 + $0x1], 1 }
 0x4c6   :  { %912 = vsyncpa [#allocation6], 1 }
 0x4c7   :  { %914 = vsyncpa [#allocation6 + $0x1], 1 }
 0x4c8   :  { %915 = vsyncpa [#allocation9], 1 }
 0x4c9   :  { %917 = vsyncpa [#allocation9 + $0x1], 1 }
 0x4ca   :  { %918 = vsyncpa [#allocation4], 1 }
 0x4cb   :  { %920 = vsyncpa [#allocation4 + $0x1], 1 }
 0x4cc   :  { %921 = vsyncpa [#allocation13], 1 }
 0x4cd   :  { %923 = vsyncpa [#allocation13 + $0x1], 1 }

</bundles_post_ra>
